<compile_context>
chip_gen: v5e
topology: v5e:2x2
jax: 0.10.0
libtpu: 0.0.40
codegen_flags: <defaults>
</compile_context>

<pallas_src>
import math

import jax
import jax.numpy as jnp
import numpy as np
from jax import lax
from jax.experimental import pallas as pl
from jax.experimental.pallas import tpu as pltpu

# --- config (small, consistent with the module) ---
B = 2          # batch
T = 8          # sequence length == block_size
C = 32         # n_embd
H = 4          # n_head
HS = C // H    # head size
N = B * T      # flattened row count processed by the single program
LN_EPS = 1e-5
GELU_K = math.sqrt(2.0 / math.pi)
NEG_BIG = -1e30   # finite mask sentinel (diagonal always unmasked -> safe)


def _layernorm(v, w, b):
    mu = jnp.mean(v, axis=-1, keepdims=True)
    var = jnp.mean((v - mu) ** 2, axis=-1, keepdims=True)
    return (v - mu) * lax.rsqrt(var + LN_EPS) * w + b


def _new_gelu(v):
    return 0.5 * v * (1.0 + jnp.tanh(GELU_K * (v + 0.044715 * v * v * v)))


def block_kernel(x_ref, mask_ref,
                 ln1w_ref, ln1b_ref,
                 wqkv_ref, bqkv_ref,
                 wpr_ref, bpr_ref,
                 ln2w_ref, ln2b_ref,
                 wfc_ref, bfc_ref,
                 wcp_ref, bcp_ref,
                 o_ref):
    x = x_ref[...]                                      # (N, C) f32
    mask = mask_ref[...]                                # (N, N) additive f32 bias

    # ---- ln_1 + causal multi-head self-attention ----
    h = _layernorm(x, ln1w_ref[...], ln1b_ref[...])     # (N, C) f32

    # Single fused QKV matmul (bf16 operands, f32 accumulate).  Columns are
    # head-major: head hh occupies lanes [hh*3*HS, (hh+1)*3*HS) as [q|k|v].
    qkv = jnp.dot(h.astype(jnp.bfloat16), wqkv_ref[...],
                  preferred_element_type=jnp.float32) + bqkv_ref[...]   # (N, 3C)

    heads = []
    for hh in range(H):                                 # static unroll over heads
        base = hh * 3 * HS
        qh = qkv[:, base:base + HS].astype(jnp.bfloat16)          # (N, HS), scale folded
        kh = qkv[:, base + HS:base + 2 * HS].astype(jnp.bfloat16)  # (N, HS)
        vh = qkv[:, base + 2 * HS:base + 3 * HS].astype(jnp.bfloat16)

        # scores = q @ k.T (contraction on last dims, no explicit transpose)
        att = lax.dot_general(qh, kh, (((1,), (1,)), ((), ())),
                              preferred_element_type=jnp.float32)  # (N, N)
        att = att + mask
        att = att - jnp.max(att, axis=-1, keepdims=True)
        e = jnp.exp(att)
        p = e / jnp.sum(e, axis=-1, keepdims=True)       # exact; rows are 16 wide

        heads.append(jnp.dot(p.astype(jnp.bfloat16), vh,
                             preferred_element_type=jnp.float32))  # (N, HS)

    # Head-major lane concat (matches PyTorch .view(B,T,C)), then ONE output
    # projection matmul with contraction depth C instead of 4 tiny K=HS ones.
    y = jnp.concatenate(heads, axis=-1)                  # (N, C) f32
    y = jnp.dot(y.astype(jnp.bfloat16), wpr_ref[...],
                preferred_element_type=jnp.float32) + bpr_ref[...]
    x1 = x + y                                           # residual 1

    # ---- ln_2 + MLP ----
    h2 = _layernorm(x1, ln2w_ref[...], ln2b_ref[...])
    f = jnp.dot(h2.astype(jnp.bfloat16), wfc_ref[...],
                preferred_element_type=jnp.float32) + bfc_ref[...]   # (N, 4C)
    f = _new_gelu(f)                                     # f32
    m = jnp.dot(f.astype(jnp.bfloat16), wcp_ref[...],
                preferred_element_type=jnp.float32) + bcp_ref[...]   # (N, C)

    o_ref[...] = x1 + m                                  # residual 2


def transformer_block(x, kp):
    """x: (B, T, C) float32.  kp: kernel-layout params from _prep_kernel_params."""
    x2d = x.reshape(N, C)
    n_inputs = 14
    vmem_spec = pl.BlockSpec(memory_space=pltpu.MemorySpace.VMEM)
    cost = pl.CostEstimate(flops=450_000, transcendentals=3_104,
                           bytes_accessed=32_000)
    out2d = pl.pallas_call(
        block_kernel,
        out_shape=jax.ShapeDtypeStruct((N, C), jnp.float32),
        in_specs=[vmem_spec] * n_inputs,
        out_specs=vmem_spec,
        cost_estimate=cost,
    )(x2d, kp["mask"],
      kp["ln1_w"], kp["ln1_b"],
      kp["w_qkv"], kp["b_qkv"],
      kp["w_pr"], kp["b_pr"],
      kp["ln2_w"], kp["ln2_b"],
      kp["w_fc"], kp["b_fc"],
      kp["w_cp"], kp["b_cp"])
    return out2d.reshape(B, T, C)


def _prep_kernel_params(p):
    """One-time host-side transform of PyTorch-layout params into kernel layout:
    head-major fused QKV weight (scale folded into Q), bf16 matmul weights,
    f32 biases, additive block-diagonal causal mask."""
    scale = 1.0 / math.sqrt(HS)
    w_qkv = p["w_qkv"]          # (C, 3C), columns = [q | k | v]
    b_qkv = p["b_qkv"][0]       # (3C,)

    wq = w_qkv[:, :C] * scale
    wk = w_qkv[:, C:2 * C]
    wv = w_qkv[:, 2 * C:]
    # head-major fused layout: head hh -> columns [hh*3*HS : (hh+1)*3*HS) = [q|k|v]
    w_fused = jnp.concatenate(
        [wq.reshape(C, H, 1, HS), wk.reshape(C, H, 1, HS), wv.reshape(C, H, 1, HS)],
        axis=2).reshape(C, 3 * C)
    bq = b_qkv[:C] * scale
    bk = b_qkv[C:2 * C]
    bv = b_qkv[2 * C:]
    b_fused = jnp.concatenate(
        [bq.reshape(H, 1, HS), bk.reshape(H, 1, HS), bv.reshape(H, 1, HS)],
        axis=1).reshape(1, 3 * C)

    # additive causal + batch-separation mask over the flattened B*T row axis
    row = np.arange(N)[:, None]
    col = np.arange(N)[None, :]
    allowed = ((row // T) == (col // T)) & ((col % T) <= (row % T))
    mask = jnp.asarray(np.where(allowed, 0.0, NEG_BIG), dtype=jnp.float32)

    bf16 = jnp.bfloat16
    return {
        "mask": mask,
        "ln1_w": p["ln1_w"], "ln1_b": p["ln1_b"],
        "w_qkv": w_fused.astype(bf16),
        "b_qkv": b_fused,                                   # f32 bias
        "w_pr": p["w_attn_proj"].astype(bf16),               # rows already head-major
        "b_pr": p["b_attn_proj"],
        "ln2_w": p["ln2_w"], "ln2_b": p["ln2_b"],
        "w_fc": p["w_fc"].astype(bf16), "b_fc": p["b_fc"],
        "w_cp": p["w_mlp_proj"].astype(bf16), "b_cp": p["b_mlp_proj"],
    }


def _reference(x, p):
    """Pure-JAX f32 reference matching the PyTorch Block forward exactly."""
    def ln(v, w, b):
        mu = jnp.mean(v, axis=-1, keepdims=True)
        var = jnp.mean((v - mu) ** 2, axis=-1, keepdims=True)
        return (v - mu) / jnp.sqrt(var + LN_EPS) * w[0] + b[0]

    h = ln(x, p["ln1_w"], p["ln1_b"])
    qkv = h @ p["w_qkv"] + p["b_qkv"][0]
    q, k, v = jnp.split(qkv, 3, axis=-1)
    q = q.reshape(B, T, H, HS).transpose(0, 2, 1, 3)
    k = k.reshape(B, T, H, HS).transpose(0, 2, 1, 3)
    v = v.reshape(B, T, H, HS).transpose(0, 2, 1, 3)
    att = jnp.einsum("bhtd,bhsd->bhts", q, k) / math.sqrt(HS)
    mask = jnp.tril(jnp.ones((T, T), dtype=bool))
    att = jnp.where(mask, att, -jnp.inf)
    att = jax.nn.softmax(att, axis=-1)
    y = jnp.einsum("bhts,bhsd->bhtd", att, v)
    y = y.transpose(0, 2, 1, 3).reshape(B, T, C)
    y = y @ p["w_attn_proj"] + p["b_attn_proj"][0]
    x1 = x + y

    h2 = ln(x1, p["ln2_w"], p["ln2_b"])
    f = h2 @ p["w_fc"] + p["b_fc"][0]
    f = 0.5 * f * (1.0 + jnp.tanh(GELU_K * (f + 0.044715 * f ** 3)))
    m = f @ p["w_mlp_proj"] + p["b_mlp_proj"][0]
    return x1 + m


def _init_params(key):
    ks = jax.random.split(key, 12)
    s = 0.02
    return {
        "ln1_w": 1.0 + 0.1 * jax.random.normal(ks[8], (1, C), jnp.float32),
        "ln1_b": 0.1 * jax.random.normal(ks[9], (1, C), jnp.float32),
        "w_qkv": s * jax.random.normal(ks[0], (C, 3 * C), jnp.float32),
        "b_qkv": s * jax.random.normal(ks[1], (1, 3 * C), jnp.float32),
        "w_attn_proj": s * jax.random.normal(ks[2], (C, C), jnp.float32),
        "b_attn_proj": s * jax.random.normal(ks[3], (1, C), jnp.float32),
        "ln2_w": 1.0 + 0.1 * jax.random.normal(ks[10], (1, C), jnp.float32),
        "ln2_b": 0.1 * jax.random.normal(ks[11], (1, C), jnp.float32),
        "w_fc": s * jax.random.normal(ks[4], (C, 4 * C), jnp.float32),
        "b_fc": s * jax.random.normal(ks[5], (1, 4 * C), jnp.float32),
        "w_mlp_proj": s * jax.random.normal(ks[6], (4 * C, C), jnp.float32),
        "b_mlp_proj": s * jax.random.normal(ks[7], (1, C), jnp.float32),
    }


if __name__ == "__main__":
    key = jax.random.PRNGKey(0)
    k_x, k_p = jax.random.split(key)
    x = jax.random.normal(k_x, (B, T, C), jnp.float32)
    params = _init_params(k_p)
    kparams = _prep_kernel_params(params)   # one-time weight transform

    out = transformer_block(x, kparams)
    out = jax.block_until_ready(out)

    ref = jax.block_until_ready(_reference(x, params))
    # bf16 matmul operands -> expected (not buggy) precision loss vs f32 ref.
    np.testing.assert_allclose(np.asarray(out), np.asarray(ref),
                               rtol=1e-2, atol=1e-2)
    print("KERNEL_OK")
</pallas_src>

<mosaic_0001>
module attributes {stable_mosaic.version = 11 : i64} {
  func.func @block_kernel(%arg0: memref<16x32xf32, #tpu.memory_space<vmem>>, %arg1: memref<16x16xf32, #tpu.memory_space<vmem>>, %arg2: memref<1x32xf32, #tpu.memory_space<vmem>>, %arg3: memref<1x32xf32, #tpu.memory_space<vmem>>, %arg4: memref<32x96xbf16, #tpu.memory_space<vmem>>, %arg5: memref<1x96xf32, #tpu.memory_space<vmem>>, %arg6: memref<32x32xbf16, #tpu.memory_space<vmem>>, %arg7: memref<1x32xf32, #tpu.memory_space<vmem>>, %arg8: memref<1x32xf32, #tpu.memory_space<vmem>>, %arg9: memref<1x32xf32, #tpu.memory_space<vmem>>, %arg10: memref<32x128xbf16, #tpu.memory_space<vmem>>, %arg11: memref<1x128xf32, #tpu.memory_space<vmem>>, %arg12: memref<128x32xbf16, #tpu.memory_space<vmem>>, %arg13: memref<1x32xf32, #tpu.memory_space<vmem>>, %arg14: memref<16x32xf32, #tpu.memory_space<vmem>>) attributes {dimension_semantics = [], scalar_prefetch = 0 : i64, scratch_operands = 0 : i64, tpu.core_type = #tpu.core_type<tc>} {
    %c0 = arith.constant 0 : index
    %c0_0 = arith.constant 0 : index
    %0 = vector.load %arg0[%c0, %c0_0] : memref<16x32xf32, #tpu.memory_space<vmem>>, vector<16x32xf32>
    %c0_1 = arith.constant 0 : index
    %c0_2 = arith.constant 0 : index
    %1 = vector.load %arg1[%c0_1, %c0_2] : memref<16x16xf32, #tpu.memory_space<vmem>>, vector<16x16xf32>
    %c0_3 = arith.constant 0 : index
    %c0_4 = arith.constant 0 : index
    %2 = vector.load %arg2[%c0_3, %c0_4] : memref<1x32xf32, #tpu.memory_space<vmem>>, vector<1x32xf32>
    %c0_5 = arith.constant 0 : index
    %c0_6 = arith.constant 0 : index
    %3 = vector.load %arg3[%c0_5, %c0_6] : memref<1x32xf32, #tpu.memory_space<vmem>>, vector<1x32xf32>
    %cst = arith.constant dense<0.000000e+00> : vector<16xf32>
    %4 = vector.multi_reduction <add>, %0, %cst [1] : vector<16x32xf32> to vector<16xf32>
    %5 = vector.shape_cast %4 : vector<16xf32> to vector<16x1xf32>
    %cst_7 = arith.constant 3.200000e+01 : f32
    %6 = vector.broadcast %cst_7 : f32 to vector<16x1xf32>
    %7 = arith.divf %5, %6 : vector<16x1xf32>
    %8 = vector.broadcast %7 : vector<16x1xf32> to vector<16x32xf32>
    %9 = arith.subf %0, %8 : vector<16x32xf32>
    %10 = arith.mulf %9, %9 : vector<16x32xf32>
    %cst_8 = arith.constant dense<0.000000e+00> : vector<16xf32>
    %11 = vector.multi_reduction <add>, %10, %cst_8 [1] : vector<16x32xf32> to vector<16xf32>
    %12 = vector.shape_cast %11 : vector<16xf32> to vector<16x1xf32>
    %cst_9 = arith.constant 3.200000e+01 : f32
    %13 = vector.broadcast %cst_9 : f32 to vector<16x1xf32>
    %14 = arith.divf %12, %13 : vector<16x1xf32>
    %15 = vector.broadcast %7 : vector<16x1xf32> to vector<16x32xf32>
    %16 = arith.subf %0, %15 : vector<16x32xf32>
    %cst_10 = arith.constant 9.99999974E-6 : f32
    %17 = vector.broadcast %cst_10 : f32 to vector<16x1xf32>
    %18 = arith.addf %14, %17 : vector<16x1xf32>
    %19 = math.rsqrt %18 : vector<16x1xf32>
    %20 = vector.broadcast %19 : vector<16x1xf32> to vector<16x32xf32>
    %21 = arith.mulf %16, %20 : vector<16x32xf32>
    %22 = vector.broadcast %2 : vector<1x32xf32> to vector<16x32xf32>
    %23 = arith.mulf %21, %22 : vector<16x32xf32>
    %24 = vector.broadcast %3 : vector<1x32xf32> to vector<16x32xf32>
    %25 = arith.addf %23, %24 : vector<16x32xf32>
    %26 = arith.truncf %25 : vector<16x32xf32> to vector<16x32xbf16>
    %c0_11 = arith.constant 0 : index
    %c0_12 = arith.constant 0 : index
    %27 = vector.load %arg4[%c0_11, %c0_12] : memref<32x96xbf16, #tpu.memory_space<vmem>>, vector<32x96xbf16>
    %cst_13 = arith.constant dense<0.000000e+00> : vector<16x96xf32>
    %28 = tpu.matmul %26, %27, %cst_13 {dimension_numbers = #tpu.dot_dimension_numbers<[1], [0], [0], [1], [0, 0, 1, 1], [], []>} : vector<16x32xbf16>, vector<32x96xbf16>, vector<16x96xf32> -> vector<16x96xf32>
    %c0_14 = arith.constant 0 : index
    %c0_15 = arith.constant 0 : index
    %29 = vector.load %arg5[%c0_14, %c0_15] : memref<1x96xf32, #tpu.memory_space<vmem>>, vector<1x96xf32>
    %30 = vector.broadcast %29 : vector<1x96xf32> to vector<16x96xf32>
    %31 = arith.addf %28, %30 : vector<16x96xf32>
    %32 = vector.extract_strided_slice %31 {offsets = [0, 0], sizes = [16, 8], strides = [1, 1]} : vector<16x96xf32> to vector<16x8xf32>
    %33 = arith.truncf %32 : vector<16x8xf32> to vector<16x8xbf16>
    %34 = vector.extract_strided_slice %31 {offsets = [0, 8], sizes = [16, 8], strides = [1, 1]} : vector<16x96xf32> to vector<16x8xf32>
    %35 = arith.truncf %34 : vector<16x8xf32> to vector<16x8xbf16>
    %36 = vector.extract_strided_slice %31 {offsets = [0, 16], sizes = [16, 8], strides = [1, 1]} : vector<16x96xf32> to vector<16x8xf32>
    %37 = arith.truncf %36 : vector<16x8xf32> to vector<16x8xbf16>
    %cst_16 = arith.constant dense<0.000000e+00> : vector<16x16xf32>
    %38 = tpu.matmul %33, %35, %cst_16 {dimension_numbers = #tpu.dot_dimension_numbers<[1], [1], [0], [0], [0, 0, 1, 0], [], []>} : vector<16x8xbf16>, vector<16x8xbf16>, vector<16x16xf32> -> vector<16x16xf32>
    %39 = arith.addf %38, %1 : vector<16x16xf32>
    %cst_17 = arith.constant dense<0xFF800000> : vector<16xf32>
    %40 = vector.multi_reduction <maximumf>, %39, %cst_17 [1] : vector<16x16xf32> to vector<16xf32>
    %41 = vector.shape_cast %40 : vector<16xf32> to vector<16x1xf32>
    %42 = vector.broadcast %41 : vector<16x1xf32> to vector<16x16xf32>
    %43 = arith.subf %39, %42 : vector<16x16xf32>
    %44 = math.exp %43 : vector<16x16xf32>
    %cst_18 = arith.constant dense<0.000000e+00> : vector<16xf32>
    %45 = vector.multi_reduction <add>, %44, %cst_18 [1] : vector<16x16xf32> to vector<16xf32>
    %46 = vector.shape_cast %45 : vector<16xf32> to vector<16x1xf32>
    %47 = vector.broadcast %46 : vector<16x1xf32> to vector<16x16xf32>
    %48 = arith.divf %44, %47 : vector<16x16xf32>
    %49 = arith.truncf %48 : vector<16x16xf32> to vector<16x16xbf16>
    %cst_19 = arith.constant dense<0.000000e+00> : vector<16x8xf32>
    %50 = tpu.matmul %49, %37, %cst_19 {dimension_numbers = #tpu.dot_dimension_numbers<[1], [0], [0], [1], [0, 0, 1, 1], [], []>} : vector<16x16xbf16>, vector<16x8xbf16>, vector<16x8xf32> -> vector<16x8xf32>
    %51 = vector.extract_strided_slice %31 {offsets = [0, 24], sizes = [16, 8], strides = [1, 1]} : vector<16x96xf32> to vector<16x8xf32>
    %52 = arith.truncf %51 : vector<16x8xf32> to vector<16x8xbf16>
    %53 = vector.extract_strided_slice %31 {offsets = [0, 32], sizes = [16, 8], strides = [1, 1]} : vector<16x96xf32> to vector<16x8xf32>
    %54 = arith.truncf %53 : vector<16x8xf32> to vector<16x8xbf16>
    %55 = vector.extract_strided_slice %31 {offsets = [0, 40], sizes = [16, 8], strides = [1, 1]} : vector<16x96xf32> to vector<16x8xf32>
    %56 = arith.truncf %55 : vector<16x8xf32> to vector<16x8xbf16>
    %cst_20 = arith.constant dense<0.000000e+00> : vector<16x16xf32>
    %57 = tpu.matmul %52, %54, %cst_20 {dimension_numbers = #tpu.dot_dimension_numbers<[1], [1], [0], [0], [0, 0, 1, 0], [], []>} : vector<16x8xbf16>, vector<16x8xbf16>, vector<16x16xf32> -> vector<16x16xf32>
    %58 = arith.addf %57, %1 : vector<16x16xf32>
    %cst_21 = arith.constant dense<0xFF800000> : vector<16xf32>
    %59 = vector.multi_reduction <maximumf>, %58, %cst_21 [1] : vector<16x16xf32> to vector<16xf32>
    %60 = vector.shape_cast %59 : vector<16xf32> to vector<16x1xf32>
    %61 = vector.broadcast %60 : vector<16x1xf32> to vector<16x16xf32>
    %62 = arith.subf %58, %61 : vector<16x16xf32>
    %63 = math.exp %62 : vector<16x16xf32>
    %cst_22 = arith.constant dense<0.000000e+00> : vector<16xf32>
    %64 = vector.multi_reduction <add>, %63, %cst_22 [1] : vector<16x16xf32> to vector<16xf32>
    %65 = vector.shape_cast %64 : vector<16xf32> to vector<16x1xf32>
    %66 = vector.broadcast %65 : vector<16x1xf32> to vector<16x16xf32>
    %67 = arith.divf %63, %66 : vector<16x16xf32>
    %68 = arith.truncf %67 : vector<16x16xf32> to vector<16x16xbf16>
    %cst_23 = arith.constant dense<0.000000e+00> : vector<16x8xf32>
    %69 = tpu.matmul %68, %56, %cst_23 {dimension_numbers = #tpu.dot_dimension_numbers<[1], [0], [0], [1], [0, 0, 1, 1], [], []>} : vector<16x16xbf16>, vector<16x8xbf16>, vector<16x8xf32> -> vector<16x8xf32>
    %70 = vector.extract_strided_slice %31 {offsets = [0, 48], sizes = [16, 8], strides = [1, 1]} : vector<16x96xf32> to vector<16x8xf32>
    %71 = arith.truncf %70 : vector<16x8xf32> to vector<16x8xbf16>
    %72 = vector.extract_strided_slice %31 {offsets = [0, 56], sizes = [16, 8], strides = [1, 1]} : vector<16x96xf32> to vector<16x8xf32>
    %73 = arith.truncf %72 : vector<16x8xf32> to vector<16x8xbf16>
    %74 = vector.extract_strided_slice %31 {offsets = [0, 64], sizes = [16, 8], strides = [1, 1]} : vector<16x96xf32> to vector<16x8xf32>
    %75 = arith.truncf %74 : vector<16x8xf32> to vector<16x8xbf16>
    %cst_24 = arith.constant dense<0.000000e+00> : vector<16x16xf32>
    %76 = tpu.matmul %71, %73, %cst_24 {dimension_numbers = #tpu.dot_dimension_numbers<[1], [1], [0], [0], [0, 0, 1, 0], [], []>} : vector<16x8xbf16>, vector<16x8xbf16>, vector<16x16xf32> -> vector<16x16xf32>
    %77 = arith.addf %76, %1 : vector<16x16xf32>
    %cst_25 = arith.constant dense<0xFF800000> : vector<16xf32>
    %78 = vector.multi_reduction <maximumf>, %77, %cst_25 [1] : vector<16x16xf32> to vector<16xf32>
    %79 = vector.shape_cast %78 : vector<16xf32> to vector<16x1xf32>
    %80 = vector.broadcast %79 : vector<16x1xf32> to vector<16x16xf32>
    %81 = arith.subf %77, %80 : vector<16x16xf32>
    %82 = math.exp %81 : vector<16x16xf32>
    %cst_26 = arith.constant dense<0.000000e+00> : vector<16xf32>
    %83 = vector.multi_reduction <add>, %82, %cst_26 [1] : vector<16x16xf32> to vector<16xf32>
    %84 = vector.shape_cast %83 : vector<16xf32> to vector<16x1xf32>
    %85 = vector.broadcast %84 : vector<16x1xf32> to vector<16x16xf32>
    %86 = arith.divf %82, %85 : vector<16x16xf32>
    %87 = arith.truncf %86 : vector<16x16xf32> to vector<16x16xbf16>
    %cst_27 = arith.constant dense<0.000000e+00> : vector<16x8xf32>
    %88 = tpu.matmul %87, %75, %cst_27 {dimension_numbers = #tpu.dot_dimension_numbers<[1], [0], [0], [1], [0, 0, 1, 1], [], []>} : vector<16x16xbf16>, vector<16x8xbf16>, vector<16x8xf32> -> vector<16x8xf32>
    %89 = vector.extract_strided_slice %31 {offsets = [0, 72], sizes = [16, 8], strides = [1, 1]} : vector<16x96xf32> to vector<16x8xf32>
    %90 = arith.truncf %89 : vector<16x8xf32> to vector<16x8xbf16>
    %91 = vector.extract_strided_slice %31 {offsets = [0, 80], sizes = [16, 8], strides = [1, 1]} : vector<16x96xf32> to vector<16x8xf32>
    %92 = arith.truncf %91 : vector<16x8xf32> to vector<16x8xbf16>
    %93 = vector.extract_strided_slice %31 {offsets = [0, 88], sizes = [16, 8], strides = [1, 1]} : vector<16x96xf32> to vector<16x8xf32>
    %94 = arith.truncf %93 : vector<16x8xf32> to vector<16x8xbf16>
    %cst_28 = arith.constant dense<0.000000e+00> : vector<16x16xf32>
    %95 = tpu.matmul %90, %92, %cst_28 {dimension_numbers = #tpu.dot_dimension_numbers<[1], [1], [0], [0], [0, 0, 1, 0], [], []>} : vector<16x8xbf16>, vector<16x8xbf16>, vector<16x16xf32> -> vector<16x16xf32>
    %96 = arith.addf %95, %1 : vector<16x16xf32>
    %cst_29 = arith.constant dense<0xFF800000> : vector<16xf32>
    %97 = vector.multi_reduction <maximumf>, %96, %cst_29 [1] : vector<16x16xf32> to vector<16xf32>
    %98 = vector.shape_cast %97 : vector<16xf32> to vector<16x1xf32>
    %99 = vector.broadcast %98 : vector<16x1xf32> to vector<16x16xf32>
    %100 = arith.subf %96, %99 : vector<16x16xf32>
    %101 = math.exp %100 : vector<16x16xf32>
    %cst_30 = arith.constant dense<0.000000e+00> : vector<16xf32>
    %102 = vector.multi_reduction <add>, %101, %cst_30 [1] : vector<16x16xf32> to vector<16xf32>
    %103 = vector.shape_cast %102 : vector<16xf32> to vector<16x1xf32>
    %104 = vector.broadcast %103 : vector<16x1xf32> to vector<16x16xf32>
    %105 = arith.divf %101, %104 : vector<16x16xf32>
    %106 = arith.truncf %105 : vector<16x16xf32> to vector<16x16xbf16>
    %cst_31 = arith.constant dense<0.000000e+00> : vector<16x8xf32>
    %107 = tpu.matmul %106, %94, %cst_31 {dimension_numbers = #tpu.dot_dimension_numbers<[1], [0], [0], [1], [0, 0, 1, 1], [], []>} : vector<16x16xbf16>, vector<16x8xbf16>, vector<16x8xf32> -> vector<16x8xf32>
    %108 = tpu.concatenate %50, %69, %88, %107 in 1 : vector<16x8xf32>, vector<16x8xf32>, vector<16x8xf32>, vector<16x8xf32> -> vector<16x32xf32>
    %109 = arith.truncf %108 : vector<16x32xf32> to vector<16x32xbf16>
    %c0_32 = arith.constant 0 : index
    %c0_33 = arith.constant 0 : index
    %110 = vector.load %arg6[%c0_32, %c0_33] : memref<32x32xbf16, #tpu.memory_space<vmem>>, vector<32x32xbf16>
    %cst_34 = arith.constant dense<0.000000e+00> : vector<16x32xf32>
    %111 = tpu.matmul %109, %110, %cst_34 {dimension_numbers = #tpu.dot_dimension_numbers<[1], [0], [0], [1], [0, 0, 1, 1], [], []>} : vector<16x32xbf16>, vector<32x32xbf16>, vector<16x32xf32> -> vector<16x32xf32>
    %c0_35 = arith.constant 0 : index
    %c0_36 = arith.constant 0 : index
    %112 = vector.load %arg7[%c0_35, %c0_36] : memref<1x32xf32, #tpu.memory_space<vmem>>, vector<1x32xf32>
    %113 = vector.broadcast %112 : vector<1x32xf32> to vector<16x32xf32>
    %114 = arith.addf %111, %113 : vector<16x32xf32>
    %115 = arith.addf %0, %114 : vector<16x32xf32>
    %c0_37 = arith.constant 0 : index
    %c0_38 = arith.constant 0 : index
    %116 = vector.load %arg8[%c0_37, %c0_38] : memref<1x32xf32, #tpu.memory_space<vmem>>, vector<1x32xf32>
    %c0_39 = arith.constant 0 : index
    %c0_40 = arith.constant 0 : index
    %117 = vector.load %arg9[%c0_39, %c0_40] : memref<1x32xf32, #tpu.memory_space<vmem>>, vector<1x32xf32>
    %cst_41 = arith.constant dense<0.000000e+00> : vector<16xf32>
    %118 = vector.multi_reduction <add>, %115, %cst_41 [1] : vector<16x32xf32> to vector<16xf32>
    %119 = vector.shape_cast %118 : vector<16xf32> to vector<16x1xf32>
    %cst_42 = arith.constant 3.200000e+01 : f32
    %120 = vector.broadcast %cst_42 : f32 to vector<16x1xf32>
    %121 = arith.divf %119, %120 : vector<16x1xf32>
    %122 = vector.broadcast %121 : vector<16x1xf32> to vector<16x32xf32>
    %123 = arith.subf %115, %122 : vector<16x32xf32>
    %124 = arith.mulf %123, %123 : vector<16x32xf32>
    %cst_43 = arith.constant dense<0.000000e+00> : vector<16xf32>
    %125 = vector.multi_reduction <add>, %124, %cst_43 [1] : vector<16x32xf32> to vector<16xf32>
    %126 = vector.shape_cast %125 : vector<16xf32> to vector<16x1xf32>
    %cst_44 = arith.constant 3.200000e+01 : f32
    %127 = vector.broadcast %cst_44 : f32 to vector<16x1xf32>
    %128 = arith.divf %126, %127 : vector<16x1xf32>
    %129 = vector.broadcast %121 : vector<16x1xf32> to vector<16x32xf32>
    %130 = arith.subf %115, %129 : vector<16x32xf32>
    %cst_45 = arith.constant 9.99999974E-6 : f32
    %131 = vector.broadcast %cst_45 : f32 to vector<16x1xf32>
    %132 = arith.addf %128, %131 : vector<16x1xf32>
    %133 = math.rsqrt %132 : vector<16x1xf32>
    %134 = vector.broadcast %133 : vector<16x1xf32> to vector<16x32xf32>
    %135 = arith.mulf %130, %134 : vector<16x32xf32>
    %136 = vector.broadcast %116 : vector<1x32xf32> to vector<16x32xf32>
    %137 = arith.mulf %135, %136 : vector<16x32xf32>
    %138 = vector.broadcast %117 : vector<1x32xf32> to vector<16x32xf32>
    %139 = arith.addf %137, %138 : vector<16x32xf32>
    %140 = arith.truncf %139 : vector<16x32xf32> to vector<16x32xbf16>
    %c0_46 = arith.constant 0 : index
    %c0_47 = arith.constant 0 : index
    %141 = vector.load %arg10[%c0_46, %c0_47] : memref<32x128xbf16, #tpu.memory_space<vmem>>, vector<32x128xbf16>
    %cst_48 = arith.constant dense<0.000000e+00> : vector<16x128xf32>
    %142 = tpu.matmul %140, %141, %cst_48 {dimension_numbers = #tpu.dot_dimension_numbers<[1], [0], [0], [1], [0, 0, 1, 1], [], []>} : vector<16x32xbf16>, vector<32x128xbf16>, vector<16x128xf32> -> vector<16x128xf32>
    %c0_49 = arith.constant 0 : index
    %c0_50 = arith.constant 0 : index
    %143 = vector.load %arg11[%c0_49, %c0_50] : memref<1x128xf32, #tpu.memory_space<vmem>>, vector<1x128xf32>
    %144 = vector.broadcast %143 : vector<1x128xf32> to vector<16x128xf32>
    %145 = arith.addf %142, %144 : vector<16x128xf32>
    %cst_51 = arith.constant 5.000000e-01 : f32
    %146 = vector.broadcast %cst_51 : f32 to vector<16x128xf32>
    %147 = arith.mulf %146, %145 : vector<16x128xf32>
    %cst_52 = arith.constant 4.471500e-02 : f32
    %148 = vector.broadcast %cst_52 : f32 to vector<16x128xf32>
    %149 = arith.mulf %148, %145 : vector<16x128xf32>
    %150 = arith.mulf %149, %145 : vector<16x128xf32>
    %151 = arith.mulf %150, %145 : vector<16x128xf32>
    %152 = arith.addf %145, %151 : vector<16x128xf32>
    %cst_53 = arith.constant 0.797884583 : f32
    %153 = vector.broadcast %cst_53 : f32 to vector<16x128xf32>
    %154 = arith.mulf %153, %152 : vector<16x128xf32>
    %155 = math.tanh %154 : vector<16x128xf32>
    %cst_54 = arith.constant 1.000000e+00 : f32
    %156 = vector.broadcast %cst_54 : f32 to vector<16x128xf32>
    %157 = arith.addf %156, %155 : vector<16x128xf32>
    %158 = arith.mulf %147, %157 : vector<16x128xf32>
    %159 = arith.truncf %158 : vector<16x128xf32> to vector<16x128xbf16>
    %c0_55 = arith.constant 0 : index
    %c0_56 = arith.constant 0 : index
    %160 = vector.load %arg12[%c0_55, %c0_56] : memref<128x32xbf16, #tpu.memory_space<vmem>>, vector<128x32xbf16>
    %cst_57 = arith.constant dense<0.000000e+00> : vector<16x32xf32>
    %161 = tpu.matmul %159, %160, %cst_57 {dimension_numbers = #tpu.dot_dimension_numbers<[1], [0], [0], [1], [0, 0, 1, 1], [], []>} : vector<16x128xbf16>, vector<128x32xbf16>, vector<16x32xf32> -> vector<16x32xf32>
    %c0_58 = arith.constant 0 : index
    %c0_59 = arith.constant 0 : index
    %162 = vector.load %arg13[%c0_58, %c0_59] : memref<1x32xf32, #tpu.memory_space<vmem>>, vector<1x32xf32>
    %163 = vector.broadcast %162 : vector<1x32xf32> to vector<16x32xf32>
    %164 = arith.addf %161, %163 : vector<16x32xf32>
    %165 = arith.addf %115, %164 : vector<16x32xf32>
    %c0_60 = arith.constant 0 : index
    %c0_61 = arith.constant 0 : index
    %166 = vector.load %arg14[%c0_60, %c0_61] : memref<16x32xf32, #tpu.memory_space<vmem>>, vector<16x32xf32>
    tpu.vector_store %arg14[%c0_60, %c0_61], %165 {strides = array<i32>} : memref<16x32xf32, #tpu.memory_space<vmem>>, vector<16x32xf32>,
    return
  }
}

</mosaic_0001>

<bundles_post_ra>
// kernel: tpu_custom_call.1
= control target key start
LH: loop header
LB: loop body
LE: loop exit
PB: predicated region body
PF: predicated region fallthrough
CT: control target
= control target key end

     0   :  { %vm55_vm0 = vcmask 261120   ;;  %s1394_s0 = inlined_call_operand.vmem [shape: f32[16,32], index: 0, kind: input, shape index: {}]   ;;  %s1395_s1 = inlined_call_operand.vmem [shape: f32[16,16], index: 1, kind: input, shape index: {}]   ;;  %s1396_s2 = inlined_call_operand.vmem [shape: f32[1,32], index: 2, kind: input, shape index: {}]   ;;  %s1397_s3 = inlined_call_operand.vmem [shape: f32[1,32], index: 3, kind: input, shape index: {}]   ;;  %s1398_s4 = inlined_call_operand.vmem [shape: bf16[32,96], index: 4, kind: input, shape index: {}]   ;;  %s1399_s5 = inlined_call_operand.vmem [shape: f32[1,96], index: 5, kind: input, shape index: {}]   ;;  %s1400_s6 = inlined_call_operand.vmem [shape: bf16[32,32], index: 6, kind: input, shape index: {}]   ;;  %s1401_s7 = inlined_call_operand.vmem [shape: f32[1,32], index: 7, kind: input, shape index: {}]   ;;  %s1402_s8 = inlined_call_operand.vmem [shape: f32[1,32], index: 8, kind: input, shape index: {}]   ;;  %s1403_s9 = inlined_call_operand.vmem [shape: f32[1,32], index: 9, kind: input, shape index: {}]   ;;  %s1404_s10 = inlined_call_operand.vmem [shape: bf16[32,128], index: 10, kind: input, shape index: {}]   ;;  %s1405_s11 = inlined_call_operand.vmem [shape: f32[1,128], index: 11, kind: input, shape index: {}]   ;;  %s1406_s12 = inlined_call_operand.vmem [shape: bf16[128,32], index: 12, kind: input, shape index: {}]   ;;  %s1407_s13 = inlined_call_operand.vmem [shape: f32[1,32], index: 13, kind: input, shape index: {}]   ;;  %s1408_s14 = inlined_call_operand.hbm [shape: f32[16,32], index: 14, kind: output, shape index: {}]  }
   0x1   :  { %v1105_v0 = vld [vmem:[%s1394_s0] sm:$0xff] }
   0x2   :  { %v56_v1 = vsel %vm55_vm0, %v1105_v0, 0.0 }
   0x3   :  { %57 = vadd.xlane.f32.xlu0 %v56_v1 }
   0x4   :  { %19 = vsyncpa [#allocation3], 0  ;;  %v1112_v2 = vld [vmem:[%s1394_s0 + $0x8] sm:$0xff]  ;;  %v1010_v4 = vmov 32.0   ;;  %v884_v23 = vld [vmem:[%s1398_s4] sm:$0xff]  ;;  %vm159_vm8 = vcmask 64512  }
   0x5   :  { %v59_v3 = vsel %vm55_vm0, %v1112_v2, 0.0  ;;  %938 = vrcp.f32 %v1010_v4  ;;  %v885_v21 = vld [vmem:[%s1398_s4 + $0x8] sm:$0xff]  ;;  %v930_v42 = vld [vmem:[%s1396_s2] ss:$0 sm:$0xff]  ;;  %s1011_s2 = smov 112   ;;  %vm180_vm9 = vcmask 130048  }
   0x6   :  { %147 = vmatpush.bf16.msra.mxu0 %v885_v21  ;;  %v931_v47 = vld [vmem:[%s1397_s3] ss:$0 sm:$0xff]  ;;  %s1012_s3 = smov 120   ;;  %s1013_s28 = smov 48  }
   0x7   :  { %v932_v53 = vld [vmem:[%s1399_s5] ss:$0 sm:$0xff]  ;;  %s1015_s29 = smov 96   ;;  %s1016_s30 = smov 72  }
   0x8   :  { %v1152_v61 = vld [vmem:[%s1395_s1] sm:$0xff]  ;;  %s1017_s15 = smov 56   ;;  %s1018_s16 = smov 80  }
   0x9   :  { %s1019_s0 = smov 88   ;;  %s1020_s17 = smov 40  }
   0xa   :  { %148 = vmatpush.bf16.msra.mxu0 %v884_v23  ;;  %s1021_s18 = smov 64   ;;  %s1022_s19 = smov 16  }
   0xb   :  { %60 = vadd.xlane.f32.xlu0 %v59_v3  ;;  %v939_v5 = vpop.eup %938  ;;  %v1159_v3 = vld [vmem:[%s1395_s1 + $0x8] sm:$0xff]  ;;  %s1014_s1 = smov 104   ;;  %s1023_s4 = smov 8  }
   0xc   :  { %v63_v6 = vmul.f32 32.0, %v939_v5  ;;  %vm67_vm1 = vweird.f32 %v939_v5  ;;  %s1024_s20 = smov 24   ;;  %s805_s5 = sshll.u32 %s1408_s14, 4  ;;  %s806_s5 = int_to_ptr.hbm [resolvable:$true] %s805_s5 }
   0xd   :  { %s1025_s25 = smov [#allocation2]  }
   0xe   :  { %v64_v7 = vsub.f32 1.0, %v63_v6 }
  0x10   :  { %v65_v8 = vmul.f32 %v939_v5, %v64_v7 }
  0x12   :  { %v66_v9 = vadd.f32 %v939_v5, %v65_v8 }
  0x14   :  { %v1116_v10 = vsel %vm67_vm1, %v939_v5, %v66_v9 }
  0x76   :  { %v58_v11 = vpop.xlane.xlu0 %57 }
  0x77   :  { %v69_v12 = vmul.f32 %v1116_v10, %v58_v11 }
  0x79   :  { %v71_v13 = vsub.f32 %v1105_v0, %v69_v12 }
  0x7b   :  { %v73_v14 = vmul.f32 %v71_v13, %v71_v13 }
  0x7d   :  { %v75_v15 = vsel %vm55_vm0, %v73_v14, 0.0 }
  0x7e   :  { %76 = vadd.xlane.f32.xlu1 %v75_v15  ;;  %v61_v16 = vpop.xlane.xlu0 %60 }
  0x7f   :  { %v70_v17 = vmul.f32 %v1116_v10, %v61_v16 }
  0x81   :  { %v72_v18 = vsub.f32 %v1112_v2, %v70_v17 }
  0x83   :  { %v74_v19 = vmul.f32 %v72_v18, %v72_v18 }
  0x85   :  { %v78_v20 = vsel %vm55_vm0, %v74_v19, 0.0 }
  0x86   :  { %79 = vadd.xlane.f32.xlu1 %v78_v20 }
  0xf1   :  { %v77_v22 = vpop.xlane.xlu1 %76 }
  0xf2   :  { %v81_v24 = vmul.f32 %v77_v22, %v1116_v10 }
  0xf4   :  { %v83_v25 = vadd.f32 1e-05, %v81_v24 }
  0xf6   :  { %940 = vrsqrt.f32 %v83_v25  ;;  %vm91_vm3 = vweird.f32 %v83_v25 }
  0xf9   :  { %v80_v26 = vpop.xlane.xlu1 %79 }
  0xfa   :  { %v82_v27 = vmul.f32 %v80_v26, %v1116_v10 }
  0xfc   :  { %v941_v28 = vpop.eup %940  ;;  %v84_v29 = vadd.f32 1e-05, %v82_v27 }
  0xfd   :  { %v86_v30 = vmul.f32 %v941_v28, %v83_v25  ;;  %vm92_vm2 = vweird.f32 %v941_v28 }
  0xfe   :  { %942 = vrsqrt.f32 %v84_v29  ;;  %vm93_vm4 = vmor %vm91_vm3, %vm92_vm2  ;;  %vm101_vm6 = vweird.f32 %v84_v29 }
  0xff   :  { %v87_v31 = vmul.f32 %v941_v28, %v86_v30 }
 0x101   :  { %v88_v32 = vmul.f32 0.5, %v87_v31 }
 0x103   :  { %v89_v33 = vsub.f32 1.5, %v88_v32 }
 0x104   :  { %v943_v34 = vpop.eup %942 }
 0x105   :  { %v90_v35 = vmul.f32 %v941_v28, %v89_v33  ;;  %v96_v36 = vmul.f32 %v943_v34, %v84_v29  ;;  %vm102_vm5 = vweird.f32 %v943_v34 }
 0x106   :  { %vm103_vm7 = vmor %vm101_vm6, %vm102_vm5 }
 0x107   :  { %v97_v37 = vmul.f32 %v943_v34, %v96_v36  ;;  %v94_v38 = vsel %vm93_vm4, %v941_v28, %v90_v35 }
 0x108   :  { %v105_v41 = vmul.f32 %v94_v38, %v71_v13 }
 0x109   :  { %v98_v39 = vmul.f32 0.5, %v97_v37 }
 0x10a   :  { %v110_v46 = vmul.f32 %v930_v42, %v105_v41 }
 0x10b   :  { %v99_v40 = vsub.f32 1.5, %v98_v39 }
 0x10c   :  { %v115_v49 = vadd.f32 %v931_v47, %v110_v46 }
 0x10d   :  { %v100_v43 = vmul.f32 %v943_v34, %v99_v40 }
 0x10f   :  { %v104_v44 = vsel %vm103_vm7, %v943_v34, %v100_v43 }
 0x110   :  { %v106_v45 = vmul.f32 %v104_v44, %v72_v18 }
 0x112   :  { %v111_v48 = vmul.f32 %v930_v42, %v106_v45 }
 0x114   :  { %v116_v50 = vadd.f32 %v931_v47, %v111_v48 }
 0x116   :  { %v117_v51 = vpack.c.bf16 %v116_v50, %v115_v49 }
 0x118   :  { %825 = vmatmul.msk.bf16.vlgmr.msra.gmra.mxu0 %vm55_vm0, %v117_v51 }
 0x195   :  { %v150_v52 = vpop.f32.mrf.mxu0 }
 0x196   :  { %v151_v55 = vadd.f32 %v932_v53, %v150_v52 }
 0x19d   :  { %v152_v54 = vpop.f32.mrf.mxu0 }
 0x19e   :  { %v153_v56 = vadd.f32 %v932_v53, %v152_v54 }
 0x1a0   :  { %v1142_v57 = vpack.c.bf16 %v153_v56, %v151_v55 }
 0x1a2   :  { %230 = vrot.lane.b32.xlu1 %v1142_v57, %s1011_s2  ;;  %157 = vrot.lane.b32.xlu2 %v1142_v57, %s1012_s3 }
 0x1fc   :  { %v158_v58 = vpop.permute.xlu2 %157 }
 0x1fd   :  { %v164_v59 = vsel %vm159_vm8, %v158_v58, 0 }
 0x1fe   :  { %173 = vmatpush.bf16.xpose.msra.mxu1 %v164_v59 }
 0x205   :  { %826 = vmatmul.msk.bf16.vlgmr.msra.gmra.mxu1 %vm159_vm8, %v1142_v57 }
 0x214   :  { %v231_v60 = vpop.permute.xlu1 %230 }
 0x215   :  { %243 = vmatpush.bf16.msra.mxu2 %v231_v60 }
 0x282   :  { %v175_v62 = vpop.f32.mrf.mxu1 }
 0x283   :  { %v176_v63 = vadd.f32 %v175_v62, %v1152_v61 }
 0x285   :  { %v181_v1 = vsel %vm180_vm9, %v176_v63, -inf }
 0x286   :  { %182 = vmax.xlane.f32.xlu2 %v181_v1 }
 0x28a   :  { %v177_v4 = vpop.f32.mrf.mxu1 }
 0x28b   :  { %v178_v5 = vadd.f32 %v177_v4, %v1159_v3 }
 0x28d   :  { %v184_v6 = vsel %vm180_vm9, %v178_v5, -inf }
 0x28e   :  { %185 = vmax.xlane.f32.xlu0 %v184_v6 }
 0x29e   :  { %438 = vrot.lane.b32.xlu2 %v1142_v57, %s1013_s28 }
 0x2f9   :  { %v183_v7 = vpop.xlane.xlu2 %182 }
 0x2fa   :  { %v187_v8 = vsub.f32 %v176_v63, %v183_v7 }
 0x2fc   :  { %v189_v9 = vmul.f32 1.442695, %v187_v8 }
 0x2fe   :  { %944 = vpow2.f32 %v189_v9 }
 0x301   :  { %v186_v11 = vpop.xlane.xlu0 %185  ;;  %v439_v12 = vpop.permute.xlu2 %438 }
 0x302   :  { %v188_v13 = vsub.f32 %v178_v5, %v186_v11  ;;  %v444_v14 = vsel %vm159_vm8, %v439_v12, 0 }
 0x303   :  { %453 = vmatpush.bf16.xpose.msra.mxu3 %v444_v14 }
 0x304   :  { %v945_v15 = vpop.eup %944  ;;  %v191_v16 = vmul.f32 1.442695, %v188_v13 }
 0x305   :  { %v193_v17 = vsel %vm180_vm9, %v945_v15, 0.0 }
 0x306   :  { %946 = vpow2.f32 %v191_v16  ;;  %194 = vadd.xlane.f32.xlu1 %v193_v17 }
 0x30c   :  { %v947_v18 = vpop.eup %946 }
 0x30d   :  { %v196_v19 = vsel %vm180_vm9, %v947_v18, 0.0 }
 0x30e   :  { %197 = vadd.xlane.f32.xlu0 %v196_v19 }
 0x31f   :  { %250 = vrot.lane.b32.xlu1 %v1142_v57, %s1014_s1 }
 0x322   :  { %252 = vrot.lane.b32.xlu0 %v1142_v57, %s1015_s29 }
 0x327   :  { %345 = vrot.lane.b32.xlu1 %v1142_v57, %s1016_s30 }
 0x32a   :  { %436 = vrot.lane.b32.xlu0 %v1142_v57, %s1017_s15 }
 0x332   :  { %343 = vrot.lane.b32.xlu0 %v1142_v57, %s1018_s16 }
 0x379   :  { %v195_v20 = vpop.xlane.xlu1 %194 }
 0x37a   :  { %948 = vrcp.f32 %v195_v20  ;;  %v210_v29 = vand.u32 2147483648, %v195_v20  ;;  %vm204_vm11 = vweird.f32 %v195_v20  ;;  %v208_v30 = vand.u32 2147483647, %v195_v20 }
 0x37c   :  { %v211_v36 = vor.u32 1.1754944e-38, %v210_v29  ;;  %vm209_vm14 = vcmp.eq.f32.partialorder %v208_v30, 8.507059e+37 }
 0x380   :  { %v949_v21 = vpop.eup %948 }
 0x381   :  { %v200_v22 = vmul.f32 %v949_v21, %v195_v20  ;;  %v198_v23 = vpop.xlane.xlu0 %197  ;;  %vm205_vm10 = vweird.f32 %v949_v21 }
 0x382   :  { %950 = vrcp.f32 %v198_v23  ;;  %vm206_vm12 = vmor %vm204_vm11, %vm205_vm10  ;;  %v225_v32 = vand.u32 2147483648, %v198_v23  ;;  %v223_v34 = vand.u32 2147483647, %v198_v23  ;;  %vm219_vm15 = vweird.f32 %v198_v23 }
 0x383   :  { %v201_v24 = vsub.f32 1.0, %v200_v22 }
 0x384   :  { %v226_v38 = vor.u32 1.1754944e-38, %v225_v32  ;;  %vm224_vm2 = vcmp.eq.f32.partialorder %v223_v34, 8.507059e+37 }
 0x385   :  { %v202_v25 = vmul.f32 %v949_v21, %v201_v24 }
 0x387   :  { %v203_v27 = vadd.f32 %v949_v21, %v202_v25 }
 0x388   :  { %v951_v26 = vpop.eup %950 }
 0x389   :  { %v215_v28 = vmul.f32 %v951_v26, %v198_v23  ;;  %vm220_vm13 = vweird.f32 %v951_v26  ;;  %v207_v35 = vsel %vm206_vm12, %v949_v21, %v203_v27 }
 0x38a   :  { %vm221_vm1 = vmor %vm219_vm15, %vm220_vm13  ;;  %v212_v39 = vsel %vm209_vm14, %v211_v36, %v207_v35 }
 0x38b   :  { %v216_v31 = vsub.f32 1.0, %v215_v28  ;;  %v213_v43 = vmul.f32 %v945_v15, %v212_v39 }
 0x38d   :  { %v217_v33 = vmul.f32 %v951_v26, %v216_v31 }
 0x38f   :  { %v218_v37 = vadd.f32 %v951_v26, %v217_v33 }
 0x391   :  { %v251_v40 = vpop.permute.xlu1 %250  ;;  %v222_v41 = vsel %vm221_vm1, %v951_v26, %v218_v37 }
 0x392   :  { %v227_v42 = vsel %vm224_vm2, %v226_v38, %v222_v41 }
 0x393   :  { %v228_v44 = vmul.f32 %v947_v18, %v227_v42 }
 0x394   :  { %v253_v45 = vpop.permute.xlu0 %252 }
 0x395   :  { %v258_v46 = vsel %vm159_vm8, %v253_v45, 0  ;;  %v229_v47 = vpack.c.bf16 %v228_v44, %v213_v43 }
 0x396   :  { %267 = vmatpush.bf16.xpose.msrb.mxu2 %v258_v46 }
 0x397   :  { %827 = vmatmul.msk.bf16.vlgmr.msra.gmra.mxu2 %vm180_vm9, %v229_v47 }
 0x399   :  { %v346_v48 = vpop.permute.xlu1 %345 }
 0x39a   :  { %v351_v49 = vsel %vm159_vm8, %v346_v48, 0 }
 0x39b   :  { %360 = vmatpush.bf16.xpose.msrb.mxu0 %v351_v49 }
 0x39c   :  { %v437_v50 = vpop.permute.xlu0 %436 }
 0x39d   :  { %832 = vmatmul.msk.bf16.vlgmr.msra.gmra.mxu3 %vm159_vm8, %v437_v50 }
 0x3a4   :  { %v344_v51 = vpop.permute.xlu0 %343 }
 0x3a5   :  { %830 = vmatmul.msk.bf16.vlgmr.msrb.gmra.mxu0 %vm159_vm8, %v344_v51 }
 0x3a7   :  { %828 = vmatmul.msk.bf16.vlgmr.msrb.gmra.mxu2 %vm159_vm8, %v251_v40 }
 0x41a   :  { %v1178_v52 = vpop.f32.mrf.mxu2 }
 0x420   :  { %v455_v53 = vpop.f32.mrf.mxu3 }
 0x421   :  { %v456_v54 = vadd.f32 %v455_v53, %v1152_v61 }
 0x422   :  { %v1181_v55 = vpop.f32.mrf.mxu2  ;;  %v362_v56 = vpop.f32.mrf.mxu0 }
 0x423   :  { %v460_v58 = vsel %vm180_vm9, %v456_v54, -inf  ;;  %v363_v12 = vadd.f32 %v362_v56, %v1152_v61 }
 0x424   :  { %461 = vmax.xlane.f32.xlu2 %v460_v58 }
 0x425   :  { %v367_v13 = vsel %vm180_vm9, %v363_v12, -inf }
 0x428   :  { %v457_v5 = vpop.f32.mrf.mxu3 }
 0x429   :  { %v458_v6 = vadd.f32 %v457_v5, %v1159_v3 }
 0x42a   :  { %v269_v59 = vpop.f32.mrf.mxu2  ;;  %v364_v60 = vpop.f32.mrf.mxu0 }
 0x42b   :  { %v270_v62 = vadd.f32 %v269_v59, %v1152_v61  ;;  %v365_v63 = vadd.f32 %v364_v60, %v1159_v3  ;;  %v463_v11 = vsel %vm180_vm9, %v458_v6, -inf }
 0x42d   :  { %v274_v1 = vsel %vm180_vm9, %v270_v62, -inf  ;;  %v370_v4 = vsel %vm180_vm9, %v365_v63, -inf }
 0x42e   :  { %275 = vmax.xlane.f32.xlu1 %v274_v1  ;;  %371 = vmax.xlane.f32.xlu2 %v370_v4 }
 0x432   :  { %v271_v7 = vpop.f32.mrf.mxu2 }
 0x433   :  { %v272_v8 = vadd.f32 %v271_v7, %v1159_v3 }
 0x435   :  { %v277_v9 = vsel %vm180_vm9, %v272_v8, -inf }
 0x436   :  { %278 = vmax.xlane.f32.xlu0 %v277_v9  ;;  %464 = vmax.xlane.f32.xlu1 %v463_v11 }
 0x43e   :  { %368 = vmax.xlane.f32.xlu0 %v367_v13 }
 0x497   :  { %v462_v14 = vpop.xlane.xlu2 %461 }
 0x498   :  { %v466_v15 = vsub.f32 %v456_v54, %v462_v14 }
 0x49a   :  { %v468_v16 = vmul.f32 1.442695, %v466_v15 }
 0x49c   :  { %952 = vpow2.f32 %v468_v16 }
 0x4a1   :  { %v276_v17 = vpop.xlane.xlu1 %275  ;;  %v372_v27 = vpop.xlane.xlu2 %371 }
 0x4a2   :  { %v1194_v18 = vpop.eup %952  ;;  %v280_v24 = vsub.f32 %v270_v62, %v276_v17  ;;  %v374_v32 = vsub.f32 %v365_v63, %v372_v27 }
 0x4a3   :  { %v472_v3 = vsel %vm180_vm9, %v1194_v18, 0.0 }
 0x4a4   :  { %473 = vadd.xlane.f32.xlu2 %v472_v3  ;;  %v282_v25 = vmul.f32 1.442695, %v280_v24  ;;  %v377_v35 = vmul.f32 1.442695, %v374_v32 }
 0x4a9   :  { %v279_v19 = vpop.xlane.xlu0 %278  ;;  %v465_v20 = vpop.xlane.xlu1 %464 }
 0x4aa   :  { %v281_v21 = vsub.f32 %v272_v8, %v279_v19  ;;  %v467_v22 = vsub.f32 %v458_v6, %v465_v20 }
 0x4ac   :  { %v284_v23 = vmul.f32 1.442695, %v281_v21  ;;  %v470_v61 = vmul.f32 1.442695, %v467_v22 }
 0x4ae   :  { %954 = vpow2.f32 %v284_v23 }
 0x4af   :  { %956 = vpow2.f32 %v470_v61 }
 0x4b0   :  { %958 = vpow2.f32 %v282_v25 }
 0x4b1   :  { %v369_v26 = vpop.xlane.xlu0 %368 }
 0x4b2   :  { %v373_v28 = vsub.f32 %v363_v12, %v369_v26 }
 0x4b4   :  { %v1198_v29 = vpop.eup %954  ;;  %v375_v30 = vmul.f32 1.442695, %v373_v28 }
 0x4b5   :  { %v1200_v31 = vpop.eup %956  ;;  %v289_v33 = vsel %vm180_vm9, %v1198_v29, 0.0 }
 0x4b6   :  { %960 = vpow2.f32 %v375_v30  ;;  %290 = vadd.xlane.f32.xlu0 %v289_v33  ;;  %v475_v34 = vsel %vm180_vm9, %v1200_v31, 0.0  ;;  %v1206_v36 = vpop.eup %958 }
 0x4b7   :  { %476 = vadd.xlane.f32.xlu1 %v475_v34  ;;  %962 = vpow2.f32 %v377_v35  ;;  %v286_v39 = vsel %vm180_vm9, %v1206_v36, 0.0 }
 0x4bc   :  { %v1208_v37 = vpop.eup %960 }
 0x4bd   :  { %v379_v38 = vsel %vm180_vm9, %v1208_v37, 0.0  ;;  %v1214_v40 = vpop.eup %962 }
 0x4be   :  { %380 = vadd.xlane.f32.xlu2 %v379_v38  ;;  %v382_v41 = vsel %vm180_vm9, %v1214_v40, 0.0 }
 0x4bf   :  { %287 = vadd.xlane.f32.xlu1 %v286_v39 }
 0x4c7   :  { %383 = vadd.xlane.f32.xlu1 %v382_v41 }
 0x4ca   :  { %323 = vrot.lane.b32.xlu0 %v1142_v57, %s1019_s0 }
 0x4d6   :  { %509 = vrot.lane.b32.xlu2 %v1142_v57, %s1020_s17 }
 0x4e0   :  { %416 = vrot.lane.b32.xlu1 %v1142_v57, %s1021_s18 }
 0x517   :  { %v1221_v42 = vpop.xlane.xlu2 %473 }
 0x529   :  { %v291_v43 = vpop.xlane.xlu0 %290 }
 0x52a   :  { %964 = vrcp.f32 %v291_v43  ;;  %v1223_v44 = vpop.xlane.xlu1 %476  ;;  %v318_v60 = vand.u32 2147483648, %v291_v43  ;;  %vm312_vm4 = vweird.f32 %v291_v43  ;;  %v316_v63 = vand.u32 2147483647, %v291_v43 }
 0x52b   :  { %966 = vrcp.f32 %v1223_v44  ;;  %v504_v41 = vand.u32 2147483648, %v1223_v44 }
 0x52c   :  { %v319_v14 = vor.u32 1.1754944e-38, %v318_v60  ;;  %vm317_vm7 = vcmp.eq.f32.partialorder %v316_v63, 8.507059e+37 }
 0x52d   :  { %v505_v60 = vor.u32 1.1754944e-38, %v504_v41 }
 0x530   :  { %v965_v45 = vpop.eup %964 }
 0x531   :  { %v308_v46 = vmul.f32 %v965_v45, %v291_v43  ;;  %v1226_v47 = vpop.xlane.xlu2 %380  ;;  %v1230_v50 = vpop.eup %966  ;;  %vm313_vm3 = vweird.f32 %v965_v45 }
 0x532   :  { %v288_v48 = vpop.xlane.xlu1 %287  ;;  %968 = vrcp.f32 %v1226_v47  ;;  %v494_v62 = vmul.f32 %v1230_v50, %v1223_v44  ;;  %vm1245_vm5 = vmor %vm312_vm4, %vm313_vm3  ;;  %vm499_vm15 = vweird.f32 %v1230_v50  ;;  %vm498_vm3 = vweird.f32 %v1223_v44 }
 0x533   :  { %v309_v49 = vsub.f32 1.0, %v308_v46  ;;  %970 = vrcp.f32 %v288_v48  ;;  %v303_v8 = vand.u32 2147483648, %v288_v48  ;;  %v301_v13 = vand.u32 2147483647, %v288_v48 }
 0x534   :  { %972 = vrcp.f32 %v1221_v42  ;;  %v495_v15 = vsub.f32 1.0, %v494_v62  ;;  %vm297_vm10 = vweird.f32 %v288_v48  ;;  %v396_v43 = vand.u32 2147483648, %v1226_v47 }
 0x535   :  { %v310_v57 = vmul.f32 %v965_v45, %v309_v49  ;;  %v304_v21 = vor.u32 1.1754944e-38, %v303_v8  ;;  %vm302_vm12 = vcmp.eq.f32.partialorder %v301_v13, 8.507059e+37  ;;  %v394_v49 = vand.u32 2147483647, %v1226_v47 }
 0x536   :  { %v496_v61 = vmul.f32 %v1230_v50, %v495_v15  ;;  %v397_v62 = vor.u32 1.1754944e-38, %v396_v43 }
 0x537   :  { %v311_v56 = vadd.f32 %v965_v45, %v310_v57 }
 0x538   :  { %v1232_v51 = vpop.eup %968  ;;  %v497_v34 = vadd.f32 %v1230_v50, %v496_v61 }
 0x539   :  { %v971_v53 = vpop.eup %970  ;;  %v386_v4 = vmul.f32 %v1232_v51, %v1226_v47  ;;  %v510_v9 = vpop.permute.xlu2 %509  ;;  %v315_v11 = vsel %vm1245_vm5, %v965_v45, %v311_v56  ;;  %vm391_vm1 = vweird.f32 %v1232_v51  ;;  %vm1275_vm5 = vmor %vm498_vm3, %vm499_vm15  ;;  %vm395_vm15 = vcmp.eq.f32.partialorder %v394_v49, 8.507059e+37 }
 0x53a   :  { %v1234_v54 = vpop.eup %972  ;;  %v293_v58 = vmul.f32 %v971_v53, %v288_v48  ;;  %v1236_v59 = vpop.xlane.xlu1 %383  ;;  %vm298_vm6 = vweird.f32 %v971_v53  ;;  %v320_v20 = vsel %vm317_vm7, %v319_v14, %v315_v11  ;;  %v502_v48 = vand.u32 2147483647, %v1223_v44 }
 0x53b   :  { %974 = vrcp.f32 %v1236_v59  ;;  %v479_v6 = vmul.f32 %v1234_v54, %v1221_v42  ;;  %v387_v17 = vsub.f32 1.0, %v386_v4  ;;  %vm299_vm11 = vmor %vm297_vm10, %vm298_vm6  ;;  %v321_v25 = vmul.f32 %v1198_v29, %v320_v20 }
 0x53c   :  { %v294_v1 = vsub.f32 1.0, %v293_v58  ;;  %v324_v5 = vpop.permute.xlu0 %323  ;;  %vm484_vm13 = vweird.f32 %v1234_v54  ;;  %v411_v29 = vand.u32 2147483648, %v1236_v59  ;;  %vm405_vm2 = vweird.f32 %v1236_v59 }
 0x53d   :  { %336 = vmatpush.bf16.msra.mxu2 %v324_v5  ;;  %v480_v19 = vsub.f32 1.0, %v479_v6  ;;  %v388_v27 = vmul.f32 %v1232_v51, %v387_v17  ;;  %v409_v38 = vand.u32 2147483647, %v1236_v59  ;;  %vm390_vm6 = vweird.f32 %v1226_v47  ;;  %v887_v17 = vld [vmem:[%s1400_s6 + $0x8] sm:$0xff] }
 0x53e   :  { %v295_v12 = vmul.f32 %v971_v53, %v294_v1  ;;  %vm483_vm7 = vweird.f32 %v1221_v42  ;;  %vm1288_vm10 = vmor %vm390_vm6, %vm391_vm1  ;;  %v412_v58 = vor.u32 1.1754944e-38, %v411_v29  ;;  %v487_v44 = vand.u32 2147483647, %v1221_v42  ;;  %590 = vmatpush.bf16.msra.mxu0 %v887_v17 }
 0x53f   :  { %v481_v30 = vmul.f32 %v1234_v54, %v480_v19  ;;  %v389_v35 = vadd.f32 %v1232_v51, %v388_v27  ;;  %v501_v47 = vsel %vm1275_vm5, %v1230_v50, %v497_v34 }
 0x540   :  { %v296_v16 = vadd.f32 %v971_v53, %v295_v12  ;;  %vm488_vm1 = vcmp.eq.f32.partialorder %v487_v44, 8.507059e+37 }
 0x541   :  { %522 = vmatpush.bf16.msrb.mxu2 %v510_v9  ;;  %v975_v3 = vpop.eup %974  ;;  %v482_v39 = vadd.f32 %v1234_v54, %v481_v30 }
 0x542   :  { %v300_v22 = vsel %vm299_vm11, %v971_v53, %v296_v16  ;;  %v401_v23 = vmul.f32 %v975_v3, %v1236_v59  ;;  %vm406_vm14 = vweird.f32 %v975_v3  ;;  %v489_v53 = vand.u32 2147483648, %v1221_v42 }
 0x543   :  { %v305_v24 = vsel %vm302_vm12, %v304_v21, %v300_v22  ;;  %vm1271_vm4 = vmor %vm405_vm2, %vm406_vm14  ;;  %v393_v59 = vsel %vm1288_vm10, %v1232_v51, %v389_v35  ;;  %vm410_vm11 = vcmp.eq.f32.partialorder %v409_v38, 8.507059e+37  ;;  %vm503_vm14 = vcmp.eq.f32.partialorder %v502_v48, 8.507059e+37 }
 0x544   :  { %v306_v26 = vmul.f32 %v1206_v36, %v305_v24  ;;  %v402_v28 = vsub.f32 1.0, %v401_v23  ;;  %vm485_vm12 = vmor %vm483_vm7, %vm484_vm13  ;;  %v490_v42 = vor.u32 1.1754944e-38, %v489_v53  ;;  %v506_v4 = vsel %vm503_vm14, %v505_v60, %v501_v47 }
 0x545   :  { %v486_v1 = vsel %vm485_vm12, %v1234_v54, %v482_v39  ;;  %v398_v5 = vsel %vm395_vm15, %v397_v62, %v393_v59  ;;  %v507_v51 = vmul.f32 %v1200_v31, %v506_v4  ;;  %vm557_vm13 = vcmask 195584   ;;  %v889_v59 = vld [vmem:[%s1404_s10 + $0x8] sm:$0xff] }
 0x546   :  { %v403_v32 = vmul.f32 %v975_v3, %v402_v28  ;;  %v322_v33 = vpack.c.bf16 %v321_v25, %v306_v26  ;;  %v491_v6 = vsel %vm488_vm1, %v490_v42, %v486_v1  ;;  %v399_v8 = vmul.f32 %v1208_v37, %v398_v5 }
 0x547   :  { %v492_v9 = vmul.f32 %v1194_v18, %v491_v6 }
 0x548   :  { %v404_v36 = vadd.f32 %v975_v3, %v403_v32  ;;  %829 = vmatmul.msk.bf16.vlgmr.msra.gmra.mxu2 %vm180_vm9, %v322_v33 }
 0x549   :  { %v508_v54 = vpack.c.bf16 %v507_v51, %v492_v9 }
 0x54a   :  { %v408_v57 = vsel %vm1271_vm4, %v975_v3, %v404_v36  ;;  %v886_v3 = vld [vmem:[%s1400_s6] sm:$0xff] }
 0x54b   :  { %v413_v63 = vsel %vm410_vm11, %v412_v58, %v408_v57  ;;  %591 = vmatpush.bf16.msra.mxu0 %v886_v3 }
 0x54c   :  { %v414_v50 = vmul.f32 %v1214_v40, %v413_v63  ;;  %v888_v63 = vld [vmem:[%s1404_s10] sm:$0xff]  ;;  %s803_s10 = sshll.u32 %s1025_s25, 4  ;;  %s804_s10 = int_to_ptr.vmem [resolvable:$true] %s803_s10 }
 0x54e   :  { %v415_v11 = vpack.c.bf16 %v414_v50, %v399_v8 }
 0x552   :  { %v417_v7 = vpop.permute.xlu1 %416 }
 0x553   :  { %429 = vmatpush.bf16.msrb.mxu1 %v417_v7 }
 0x556   :  { %831 = vmatmul.msk.bf16.vlgmr.msrb.gmra.mxu1 %vm180_vm9, %v415_v11 }
 0x557   :  { %686 = vmatpush.bf16.msra.mxu1 %v889_v59  ;;  %v937_v59 = vld [vmem:[%s1407_s13] ss:$0 sm:$0xff]  ;;  %s1026_s13 = smov 128  }
 0x558   :  { %833 = vmatmul.msk.bf16.vlgmr.msrb.gmra.mxu2 %vm180_vm9, %v508_v54 }
 0x55b   :  { %687 = vmatpush.bf16.msra.mxu1 %v888_v63 }
 0x5cb   :  { %v338_v12 = vpop.f32.mrf.mxu2 }
 0x5d3   :  { %v431_v13 = vpop.f32.mrf.mxu1  ;;  %v340_v14 = vpop.f32.mrf.mxu2 }
 0x5d4   :  { %v920_v16 = vpack.i.bf16 %v340_v14, %v338_v12 }
 0x5db   :  { %v433_v15 = vpop.f32.mrf.mxu1  ;;  %v524_v31 = vpop.f32.mrf.mxu2 }
 0x5dc   :  { %v915_v40 = vpack.i.bf16 %v433_v15, %v431_v13 }
 0x5de   :  { %916 = vrot.lane.b32.xlu0 %v915_v40, %s1022_s19 }
 0x5e3   :  { %v526_v37 = vpop.f32.mrf.mxu2 }
 0x5e4   :  { %v925_v18 = vpack.i.bf16 %v526_v37, %v524_v31 }
 0x5e6   :  { %921 = vrot.lane.b32.xlu0 %v920_v16, %s1023_s4  ;;  %v935_v16 = vld [vmem:[%s1403_s9] ss:$0 sm:$0xff] }
 0x5ee   :  { %926 = vrot.lane.b32.xlu0 %v925_v18, %s1024_s20 }
 0x650   :  { %v917_v19 = vpop.permute.xlu0 %916 }
 0x651   :  { %v919_v24 = vunpack.i.h.bf16 %v917_v19  ;;  %v918_v25 = vunpack.i.l.bf16 %v917_v19 }
 0x658   :  { %v922_v20 = vpop.permute.xlu0 %921 }
 0x659   :  { %v924_v21 = vunpack.i.h.bf16 %v922_v20  ;;  %v923_v22 = vunpack.i.l.bf16 %v922_v20 }
 0x65b   :  { %v554_v23 = vsel %vm159_vm8, %v1181_v55, %v924_v21  ;;  %v553_v61 = vsel %vm159_vm8, %v1178_v52, %v923_v22  ;;  %v933_v55 = vld [vmem:[%s1401_s7] ss:$0 sm:$0xff]  ;;  %v897_v21 = vld [vmem:[%s1406_s12 + $0x38] sm:$0xff]  ;;  %v896_v22 = vld [vmem:[%s1406_s12 + $0x30] sm:$0xff] }
 0x65c   :  { %v555_v30 = vsel %vm180_vm9, %v553_v61, %v918_v25  ;;  %v556_v32 = vsel %vm180_vm9, %v554_v23, %v919_v24  ;;  %781 = vmatpush.bf16.msrb.mxu3 %v897_v21  ;;  %v895_v23 = vld [vmem:[%s1406_s12 + $0x28] sm:$0xff]  ;;  %v894_v61 = vld [vmem:[%s1406_s12 + $0x20] sm:$0xff]  ;;  %v893_v24 = vld [vmem:[%s1406_s12 + $0x18] sm:$0xff] }
 0x65d   :  { %v892_v25 = vld [vmem:[%s1406_s12 + $0x10] sm:$0xff] }
 0x660   :  { %v927_v26 = vpop.permute.xlu0 %926  ;;  %782 = vmatpush.bf16.msrb.mxu3 %v896_v22 }
 0x661   :  { %v929_v27 = vunpack.i.h.bf16 %v927_v26  ;;  %v928_v28 = vunpack.i.l.bf16 %v927_v26  ;;  %v891_v26 = vld [vmem:[%s1406_s12 + $0x8] sm:$0xff] }
 0x663   :  { %v559_v33 = vsel %vm557_vm13, %v556_v32, %v929_v27  ;;  %v558_v34 = vsel %vm557_vm13, %v555_v30, %v928_v28  ;;  %v936_v27 = vld [vmem:[%s1405_s11] ss:$0 sm:$0xff] }
 0x664   :  { %v560_v29 = vpack.c.bf16 %v559_v33, %v558_v34  ;;  %783 = vmatpush.bf16.msrb.mxu3 %v895_v23  ;;  %v890_v28 = vld [vmem:[%s1406_s12] sm:$0xff] }
 0x666   :  { %842 = vmatmul.msk.bf16.vlgmr.msra.gmra.mxu0 %vm55_vm0, %v560_v29 }
 0x668   :  { %784 = vmatpush.bf16.msrb.mxu3 %v894_v61 }
 0x66c   :  { %785 = vmatpush.bf16.msrb.mxu3 %v893_v24 }
 0x670   :  { %786 = vmatpush.bf16.msrb.mxu3 %v892_v25 }
 0x674   :  { %787 = vmatpush.bf16.msrb.mxu3 %v891_v26 }
 0x678   :  { %788 = vmatpush.bf16.msrb.mxu3 %v890_v28 }
 0x6e3   :  { %v593_v52 = vpop.f32.mrf.mxu0 }
 0x6e4   :  { %v594_v35 = vadd.f32 %v933_v55, %v593_v52 }
 0x6e6   :  { %v1326_v36 = vadd.f32 %v594_v35, %v1105_v0 }
 0x6e8   :  { %v602_v38 = vsel %vm55_vm0, %v1326_v36, 0.0 }
 0x6e9   :  { %603 = vadd.xlane.f32.xlu2 %v602_v38 }
 0x6eb   :  { %v595_v39 = vpop.f32.mrf.mxu0 }
 0x6ec   :  { %v596_v41 = vadd.f32 %v933_v55, %v595_v39 }
 0x6ee   :  { %v1331_v43 = vadd.f32 %v596_v41, %v1112_v2 }
 0x6f0   :  { %v605_v45 = vsel %vm55_vm0, %v1331_v43, 0.0 }
 0x6f1   :  { %606 = vadd.xlane.f32.xlu1 %v605_v45 }
 0x75c   :  { %v604_v46 = vpop.xlane.xlu2 %603 }
 0x75d   :  { %v608_v48 = vmul.f32 %v604_v46, %v1116_v10 }
 0x75f   :  { %v610_v49 = vsub.f32 %v1326_v36, %v608_v48 }
 0x761   :  { %v612_v0 = vmul.f32 %v610_v49, %v610_v49 }
 0x763   :  { %v614_v57 = vsel %vm55_vm0, %v612_v0, 0.0 }
 0x764   :  { %v607_v53 = vpop.xlane.xlu1 %606  ;;  %615 = vadd.xlane.f32.xlu0 %v614_v57 }
 0x765   :  { %v609_v56 = vmul.f32 %v607_v53, %v1116_v10 }
 0x767   :  { %v611_v58 = vsub.f32 %v1331_v43, %v609_v56 }
 0x769   :  { %v613_v2 = vmul.f32 %v611_v58, %v611_v58 }
 0x76b   :  { %v617_v44 = vsel %vm55_vm0, %v613_v2, 0.0 }
 0x76c   :  { %618 = vadd.xlane.f32.xlu2 %v617_v44 }
 0x7d7   :  { %v616_v47 = vpop.xlane.xlu0 %615 }
 0x7d8   :  { %v620_v60 = vmul.f32 %v616_v47, %v1116_v10 }
 0x7da   :  { %v622_v62 = vadd.f32 1e-05, %v620_v60 }
 0x7dc   :  { %976 = vrsqrt.f32 %v622_v62  ;;  %vm630_vm9 = vweird.f32 %v622_v62 }
 0x7df   :  { %v619_v1 = vpop.xlane.xlu2 %618 }
 0x7e0   :  { %v621_v42 = vmul.f32 %v619_v1, %v1116_v10  ;;  %v934_v10 = vld [vmem:[%s1402_s8] ss:$0 sm:$0xff] }
 0x7e2   :  { %v977_v4 = vpop.eup %976  ;;  %v623_v5 = vadd.f32 1e-05, %v621_v42 }
 0x7e3   :  { %v625_v50 = vmul.f32 %v977_v4, %v622_v62  ;;  %vm631_vm8 = vweird.f32 %v977_v4 }
 0x7e4   :  { %978 = vrsqrt.f32 %v623_v5  ;;  %vm632_vm2 = vmor %vm630_vm9, %vm631_vm8  ;;  %vm640_vm4 = vweird.f32 %v623_v5 }
 0x7e5   :  { %v626_v6 = vmul.f32 %v977_v4, %v625_v50 }
 0x7e7   :  { %v627_v51 = vmul.f32 0.5, %v626_v6 }
 0x7e9   :  { %v628_v7 = vsub.f32 1.5, %v627_v51 }
 0x7ea   :  { %v979_v8 = vpop.eup %978 }
 0x7eb   :  { %v629_v9 = vmul.f32 %v977_v4, %v628_v7  ;;  %v635_v11 = vmul.f32 %v979_v8, %v623_v5  ;;  %vm641_vm3 = vweird.f32 %v979_v8 }
 0x7ec   :  { %vm642_vm5 = vmor %vm640_vm4, %vm641_vm3 }
 0x7ed   :  { %v636_v54 = vmul.f32 %v979_v8, %v635_v11  ;;  %v633_v12 = vsel %vm632_vm2, %v977_v4, %v629_v9 }
 0x7ee   :  { %v644_v15 = vmul.f32 %v633_v12, %v610_v49 }
 0x7ef   :  { %v637_v13 = vmul.f32 0.5, %v636_v54 }
 0x7f0   :  { %v649_v37 = vmul.f32 %v934_v10, %v644_v15 }
 0x7f1   :  { %v638_v14 = vsub.f32 1.5, %v637_v13 }
 0x7f2   :  { %v654_v3 = vadd.f32 %v935_v16, %v649_v37 }
 0x7f3   :  { %v639_v40 = vmul.f32 %v979_v8, %v638_v14 }
 0x7f5   :  { %v643_v31 = vsel %vm642_vm5, %v979_v8, %v639_v40 }
 0x7f6   :  { %v645_v18 = vmul.f32 %v643_v31, %v611_v58 }
 0x7f8   :  { %v650_v17 = vmul.f32 %v934_v10, %v645_v18 }
 0x7fa   :  { %v655_v19 = vadd.f32 %v935_v16, %v650_v17 }
 0x7fc   :  { %v656_v20 = vpack.c.bf16 %v655_v19, %v654_v3 }
 0x7fe   :  { %851 = vmatmul.msk.bf16.vlgmr.msra.gmra.mxu1 %vm55_vm0, %v656_v20 }
 0x87b   :  { %v689_v30 = vpop.f32.mrf.mxu1 }
 0x87c   :  { %v690_v32 = vadd.f32 %v936_v27, %v689_v30 }
 0x87e   :  { %v696_v33 = vmul.f32 0.044715, %v690_v32  ;;  %v694_v53 = vmul.f32 0.5, %v690_v32 }
 0x880   :  { %v698_v34 = vmul.f32 %v696_v33, %v690_v32 }
 0x882   :  { %v700_v29 = vmul.f32 %v698_v34, %v690_v32 }
 0x883   :  { %v691_v55 = vpop.f32.mrf.mxu1 }
 0x884   :  { %v692_v52 = vadd.f32 %v936_v27, %v691_v55  ;;  %v702_v35 = vadd.f32 %v700_v29, %v690_v32 }
 0x886   :  { %v697_v38 = vmul.f32 0.044715, %v692_v52  ;;  %v704_v41 = vmul.f32 0.7978846, %v702_v35  ;;  %v695_v56 = vmul.f32 0.5, %v692_v52 }
 0x888   :  { %v699_v39 = vmul.f32 %v697_v38, %v692_v52  ;;  %980 = vtanh.f32 %v704_v41 }
 0x88a   :  { %v701_v45 = vmul.f32 %v699_v39, %v692_v52 }
 0x88c   :  { %v703_v46 = vadd.f32 %v701_v45, %v692_v52 }
 0x88e   :  { %v705_v48 = vmul.f32 0.7978846, %v703_v46  ;;  %v981_v49 = vpop.eup %980 }
 0x88f   :  { %v708_v0 = vadd.f32 1.0, %v981_v49 }
 0x890   :  { %982 = vtanh.f32 %v705_v48 }
 0x891   :  { %v710_v2 = vmul.f32 %v708_v0, %v694_v53 }
 0x896   :  { %v983_v57 = vpop.eup %982 }
 0x897   :  { %v709_v58 = vadd.f32 1.0, %v983_v57 }
 0x899   :  { %v711_v44 = vmul.f32 %v709_v58, %v695_v56 }
 0x89b   :  { %v712_v47 = vpack.c.bf16 %v711_v44, %v710_v2 }
 0x89d   :  { %789 = vmatmul.bf16.vlgmr.msrb.gmra.mxu3 %v712_v47 }
 0x920   :  { %v790_v60 = vpop.f32.mrf.mxu3 }
 0x921   :  { %v791_v62 = vadd.f32 %v937_v59, %v790_v60 }
 0x923   :  { %v795_v63 = vadd.f32 %v791_v62, %v1326_v36 }
 0x925   :  { %797 = vst.msk [vmem:[#allocation2] sm:$0xff] %vm55_vm0, %v795_v63 }
 0x928   :  { %v792_v1 = vpop.f32.mrf.mxu3 }
 0x929   :  { %v793_v42 = vadd.f32 %v937_v59, %v792_v1 }
 0x92b   :  { %v796_v4 = vadd.f32 %v793_v42, %v1331_v43 }
 0x92d   :  { %798 = vst.msk [vmem:[#allocation2 + $0x8] sm:$0xff] %vm55_vm0, %v796_v4 }
 0x92e   :  { %811 = dma.vmem_to_hbm [thread:$0]  %s804_s10, 256, %s806_s5, [#allocation3], %s1026_s13, %s1026_s13, %s1023_s4  }
 0x92f   :  { %1008 = dma.done.wait [#allocation3], 256  }
 0x930   :  { %1009 = vsyncadd [#allocation3], 4294967040 }
 0x931   :  { %816 = vsyncpa [#allocation3], 1 }

</bundles_post_ra>
